<compile_context>
chip_gen: v7x
topology: tpu7x:2x2x1
jax: 0.10.0
libtpu: 0.0.40
codegen_flags: <defaults>
</compile_context>

<pallas_src>
import jax
import jax.numpy as jnp
from jax.experimental import pallas as pl
from jax.experimental.pallas import tpu as pltpu

block_size = 32
n_embd = 64
head_size = 16
dropout = 0.0  # dropout == 0.0 -> identity; TODO(synk): no dropout RNG applied


def head_kernel(x_ref, wqkv_ref, o_ref):
    # x_ref: (Bt, T, C) block of batch elements (bf16).
    # wqkv_ref: (C, 3H) fused [K | scaled-Q | V] weight (bf16), resident.
    # o_ref: (Bt, T*H) lane-dense output slab (f32).
    Bt, T, C = x_ref.shape
    H = o_ref.shape[-1] // T

    x = x_ref[...]                      # (Bt, T, C)
    w = wqkv_ref[...]                   # (C, 3H)

    # Fused QKV projection as a single flattened MXU matmul, f32 accumulation.
    x2d = x.reshape(Bt * T, C)
    kqv = jnp.dot(x2d, w, preferred_element_type=jnp.float32)   # (Bt*T, 3H)
    kqv = kqv.reshape(Bt, T, 3 * H)
    k = kqv[:, :, 0:H]                  # (Bt, T, H)  f32
    q = kqv[:, :, H:2 * H]              # already carries the 1/sqrt(C) scale
    v = kqv[:, :, 2 * H:3 * H]

    # Scores: contract on H directly (batched dot_general, no k transpose).
    wei = jnp.einsum("btd,bsd->bts", q, k,
                     preferred_element_type=jnp.float32)        # (Bt, T, T)

    # Causal (lower-triangular) mask, broadcast over the batch dimension.
    row = jax.lax.broadcasted_iota(jnp.int32, (T, T), 0)
    col = jax.lax.broadcasted_iota(jnp.int32, (T, T), 1)
    causal = (row >= col)[None, :, :]                           # (1, T, T)
    wei = jnp.where(causal, wei, -jnp.inf)

    # Numerically stable softmax along the last axis (f32 throughout).
    wei = wei - jnp.max(wei, axis=-1, keepdims=True)
    wei = jnp.exp(wei)
    wei = wei * pl.reciprocal(jnp.sum(wei, axis=-1, keepdims=True), approx=True)

    # dropout p = 0.0 -> identity

    out = jnp.einsum("bts,bsh->bth", wei, v,
                     preferred_element_type=jnp.float32)        # (Bt, T, H)
    # Lane-dense store: (Bt, T*H) so the writeback DMA moves full 128-lane rows.
    o_ref[...] = out.reshape(Bt, T * H).astype(o_ref.dtype)


def _pick_batch_tile(B, batch_tile):
    """Choose the per-step batch tile.

    Prefers big tiles (amortize per-step overhead) but keeps >= 2 grid steps
    when B is large enough (v7x megacore), and keeps the output slab's
    second-minor dim either a multiple of 8 or the full batch (layout rule).
    """
    Bt = min(batch_tile, B)
    if B >= 16:
        Bt = min(Bt, -(-B // 2))        # at most half the batch -> grid >= 2
    if Bt != B:
        Bt = max(8, (Bt // 8) * 8)      # multiple of 8 for the (Bt, T*H) slab
    return Bt


def head_forward(x, wk, wq, wv, *, batch_tile=128, compute_dtype=jnp.bfloat16):
    """x: (B, T, C) float32; wk/wq/wv: (C, H) float32 -> (B, T, H) float32."""
    B, T, C = x.shape
    H = wk.shape[1]

    # Fuse the three projection weights into one (C, 3H) operand and fold the
    # 1/sqrt(C) score scale into the Q columns (one-time op, matches the
    # PyTorch reference which scales by C ** -0.5, i.e. n_embd, not head_size).
    scale = C ** (-0.5)
    wqkv = jnp.concatenate([wk, wq * scale, wv], axis=1).astype(compute_dtype)
    x_in = x.astype(compute_dtype)

    Bt = _pick_batch_tile(B, batch_tile)
    grid_b = pl.cdiv(B, Bt)

    out = pl.pallas_call(
        head_kernel,
        out_shape=jax.ShapeDtypeStruct((B, T * H), jnp.float32),
        grid_spec=pltpu.PrefetchScalarGridSpec(
            num_scalar_prefetch=0,
            grid=(grid_b,),
            in_specs=[
                pl.BlockSpec((Bt, T, C), lambda b: (b, 0, 0)),
                pl.BlockSpec((C, 3 * H), lambda b: (0, 0)),   # resident weight
            ],
            out_specs=pl.BlockSpec((Bt, T * H), lambda b: (b, 0)),
        ),
        compiler_params=pltpu.CompilerParams(
            dimension_semantics=("parallel",),
            vmem_limit_bytes=48 * 1024 * 1024),
    )(x_in, wqkv)

    # Free reshape back to (B, T, H).
    return out.reshape(B, T, H)


def reference_head(x, wk, wq, wv):
    """Pure-JAX reference matching the PyTorch forward (f32 end to end)."""
    B, T, C = x.shape
    k = x @ wk
    q = x @ wq
    v = x @ wv
    wei = jnp.einsum("btd,bsd->bts", q, k) * (C ** -0.5)
    mask = jnp.tril(jnp.ones((T, T), dtype=bool))
    wei = jnp.where(mask, wei, -jnp.inf)
    wei = jax.nn.softmax(wei, axis=-1)
    return wei @ v


if __name__ == "__main__":
    key = jax.random.PRNGKey(0)
    kx, kk, kq, kv = jax.random.split(key, 4)

    C, H = n_embd, head_size
    # Deterministic "Linear(bias=False)" weights, stored as (C, H) = W_linear.T
    bound = 1.0 / (C ** 0.5)
    wk = jax.random.uniform(kk, (C, H), jnp.float32, -bound, bound)
    wq = jax.random.uniform(kq, (C, H), jnp.float32, -bound, bound)
    wv = jax.random.uniform(kv, (C, H), jnp.float32, -bound, bound)

    # Case 1: tiny shapes (B=2, T=8) — single grid step, full-array blocks.
    x_small = jax.random.normal(kx, (2, 8, C), dtype=jnp.float32)
    out_small = jax.block_until_ready(head_forward(x_small, wk, wq, wv))
    ref_small = reference_head(x_small, wk, wq, wv)
    assert out_small.shape == (2, 8, H)
    assert jnp.allclose(out_small, ref_small, atol=1e-2, rtol=1e-2), \
        "mismatch vs reference (small)"

    # Case 2: batched path — B=96 -> Bt=48, grid=(2,), no padding copy.
    x_big = jax.random.normal(kx, (96, block_size, C), dtype=jnp.float32)
    out_big = jax.block_until_ready(head_forward(x_big, wk, wq, wv))
    ref_big = reference_head(x_big, wk, wq, wv)
    assert out_big.shape == (96, block_size, H)
    assert jnp.allclose(out_big, ref_big, atol=1e-2, rtol=1e-2), \
        "mismatch vs reference (batched)"

    print("KERNEL_OK")
</pallas_src>

<mosaic_0001>
module attributes {stable_mosaic.version = 11 : i64} {
  func.func @head_kernel(%arg0: i32, %arg1: memref<2x8x64xbf16, #tpu.memory_space<vmem>>, %arg2: memref<64x48xbf16, #tpu.memory_space<vmem>>, %arg3: memref<2x128xf32, #tpu.memory_space<vmem>>) attributes {dimension_semantics = [#tpu.dimension_semantics<parallel>], iteration_bounds = array<i64: 1>, scalar_prefetch = 0 : i64, scratch_operands = 0 : i64, tpu.core_type = #tpu.core_type<tc>, window_params = [{transform_indices = @transform_0, window_bounds = array<i64: 2, 8, 64>}, {pipeline_mode = #tpu.pipeline_mode<synchronous>, transform_indices = @transform_1, window_bounds = array<i64: 64, 48>}, {transform_indices = @transform_2, window_bounds = array<i64: 2, 128>}]} {
    %c0 = arith.constant 0 : index
    %c0_0 = arith.constant 0 : index
    %c0_1 = arith.constant 0 : index
    %0 = vector.load %arg1[%c0, %c0_0, %c0_1] : memref<2x8x64xbf16, #tpu.memory_space<vmem>>, vector<2x8x64xbf16>
    %c0_2 = arith.constant 0 : index
    %c0_3 = arith.constant 0 : index
    %1 = vector.load %arg2[%c0_2, %c0_3] : memref<64x48xbf16, #tpu.memory_space<vmem>>, vector<64x48xbf16>
    %2 = vector.shape_cast %0 : vector<2x8x64xbf16> to vector<16x64xbf16>
    %cst = arith.constant dense<0.000000e+00> : vector<16x48xf32>
    %3 = tpu.matmul %2, %1, %cst {dimension_numbers = #tpu.dot_dimension_numbers<[1], [0], [0], [1], [0, 0, 1, 1], [], []>} : vector<16x64xbf16>, vector<64x48xbf16>, vector<16x48xf32> -> vector<16x48xf32>
    %4 = vector.shape_cast %3 : vector<16x48xf32> to vector<2x8x48xf32>
    %5 = vector.extract_strided_slice %4 {offsets = [0, 0, 0], sizes = [2, 8, 16], strides = [1, 1, 1]} : vector<2x8x48xf32> to vector<2x8x16xf32>
    %6 = vector.extract_strided_slice %4 {offsets = [0, 0, 16], sizes = [2, 8, 16], strides = [1, 1, 1]} : vector<2x8x48xf32> to vector<2x8x16xf32>
    %7 = vector.extract_strided_slice %4 {offsets = [0, 0, 32], sizes = [2, 8, 16], strides = [1, 1, 1]} : vector<2x8x48xf32> to vector<2x8x16xf32>
    "tpu.trace_start"() <{level = 10 : i32, message = "btd,bsd->bts"}> : () -> ()
    %cst_4 = arith.constant dense<0.000000e+00> : vector<2x8x8xf32>
    %8 = tpu.matmul %6, %5, %cst_4 {dimension_numbers = #tpu.dot_dimension_numbers<[2], [2], [1], [1], [0, 0, 0, 1, 1, 1], [0], [0]>} : vector<2x8x16xf32>, vector<2x8x16xf32>, vector<2x8x8xf32> -> vector<2x8x8xf32>
    "tpu.trace_stop"() : () -> ()
    %9 = tpu.iota {dimensions = array<i32: 0>} : vector<8x8xi32>
    %10 = tpu.iota {dimensions = array<i32: 1>} : vector<8x8xi32>
    %11 = arith.cmpi sge, %9, %10 : vector<8x8xi32>
    %12 = vector.shape_cast %11 : vector<8x8xi1> to vector<1x8x8xi1>
    %cst_5 = arith.constant 0xFF800000 : f32
    %13 = vector.shape_cast %12 : vector<1x8x8xi1> to vector<1x8x8xi1>
    %14 = vector.broadcast %13 : vector<1x8x8xi1> to vector<2x8x8xi1>
    %15 = vector.broadcast %cst_5 : f32 to vector<2x8x8xf32>
    %16 = arith.select %14, %8, %15 : vector<2x8x8xi1>, vector<2x8x8xf32>
    %cst_6 = arith.constant dense<0xFF800000> : vector<2x8xf32>
    %17 = vector.multi_reduction <maximumf>, %16, %cst_6 [2] : vector<2x8x8xf32> to vector<2x8xf32>
    %18 = vector.shape_cast %17 : vector<2x8xf32> to vector<2x8x1xf32>
    %19 = vector.broadcast %18 : vector<2x8x1xf32> to vector<2x8x8xf32>
    %20 = arith.subf %16, %19 : vector<2x8x8xf32>
    %21 = math.exp %20 : vector<2x8x8xf32>
    %cst_7 = arith.constant dense<0.000000e+00> : vector<2x8xf32>
    %22 = vector.multi_reduction <add>, %21, %cst_7 [2] : vector<2x8x8xf32> to vector<2x8xf32>
    %23 = vector.shape_cast %22 : vector<2x8xf32> to vector<2x8x1xf32>
    %24 = tpu.reciprocal %23 {approx = true} : vector<2x8x1xf32> -> vector<2x8x1xf32>
    %25 = vector.broadcast %24 : vector<2x8x1xf32> to vector<2x8x8xf32>
    %26 = arith.mulf %21, %25 : vector<2x8x8xf32>
    "tpu.trace_start"() <{level = 10 : i32, message = "bts,bsh->bth"}> : () -> ()
    %cst_8 = arith.constant dense<0.000000e+00> : vector<2x8x16xf32>
    %27 = tpu.matmul %26, %7, %cst_8 {dimension_numbers = #tpu.dot_dimension_numbers<[2], [1], [1], [2], [0, 0, 0, 1, 1, 2], [0], [0]>} : vector<2x8x8xf32>, vector<2x8x16xf32>, vector<2x8x16xf32> -> vector<2x8x16xf32>
    "tpu.trace_stop"() : () -> ()
    %28 = vector.shape_cast %27 : vector<2x8x16xf32> to vector<2x128xf32>
    %c0_9 = arith.constant 0 : index
    %c0_10 = arith.constant 0 : index
    %29 = vector.load %arg3[%c0_9, %c0_10] : memref<2x128xf32, #tpu.memory_space<vmem>>, vector<2x128xf32>
    tpu.vector_store %arg3[%c0_9, %c0_10], %28 {strides = array<i32>} : memref<2x128xf32, #tpu.memory_space<vmem>>, vector<2x128xf32>,
    return
  }
  func.func @transform_0(%arg0: i32) -> (i32, i32, i32) {
    %c0_i32 = arith.constant 0 : i32
    %c0_i32_0 = arith.constant 0 : i32
    %c0_i32_1 = arith.constant 0 : i32
    return %arg0, %c0_i32, %c0_i32_0 : i32, i32, i32
  }
  func.func @transform_1(%arg0: i32) -> (i32, i32) {
    %c0_i32 = arith.constant 0 : i32
    %c0_i32_0 = arith.constant 0 : i32
    %c0_i32_1 = arith.constant 0 : i32
    return %c0_i32, %c0_i32_0 : i32, i32
  }
  func.func @transform_2(%arg0: i32) -> (i32, i32) {
    %c0_i32 = arith.constant 0 : i32
    %c0_i32_0 = arith.constant 0 : i32
    return %arg0, %c0_i32 : i32, i32
  }
}

</mosaic_0001>

<bundles_post_ra>
// kernel: tpu_custom_call.1
= control target key start
LH: loop header
LB: loop body
LE: loop exit
PB: predicated region body
PF: predicated region fallthrough
CT: control target
= control target key end

     0   :  { %v663_v1 = vmov 0.0   ;;  %vm664_vm0 = vmmov 0   ;;  %s760_s0 = inlined_call_operand.vmem [shape: bf16[2,8,64], index: 0, kind: input, shape index: {}]   ;;  %s761_s1 = inlined_call_operand.vmem [shape: bf16[64,48], index: 1, kind: input, shape index: {}]   ;;  %s762_s2 = inlined_call_operand.hbm [shape: f32[2,128], index: 2, kind: output, shape index: {}]  }
   0x1   :  { %v626_v0 = vld [vmem:[%s761_s1] sm:$0xff]   ;;  %582 = vmatprep.subr.bf16.mxu0 %v663_v1  ;;  %594 = vmatprep.subr.mxu1 %v663_v1  ;;  %v627_v2 = vld [vmem:[%s761_s1 + $0x8] sm:$0xff]  }
   0x2   :  { %583 = vmatpush3.bf16.msra.mxu0 %v626_v0  ;;  %590 = vmatprep.mubr.msk.bf16.mxu0 %vm664_vm0, %v663_v1 }
   0x3   :  { %584 = vmatprep.subr.bf16.mxu0 %v663_v1  ;;  %596 = vmatprep.mubr.msk.f32.mxu1 %vm664_vm0, %v663_v1 }
   0x4   :  { %7 = vsyncpa [#allocation3], 0  ;;  %v628_v3 = vld [vmem:[%s761_s1 + $0x10] sm:$0xff]   ;;  %v629_v4 = vld [vmem:[%s761_s1 + $0x18] sm:$0xff]   ;;  %vm52_vm1 = vcmask 523264   ;;  %vm100_vm2 = vcmask 130048   ;;  %v252_v12 = vlaneseq }
   0x5   :  { %v630_v5 = vld [vmem:[%s760_s0] sm:$0xff]   ;;  %s665_s19 = smov 112   ;;  %vm261_vm4 = vcmask 64512   ;;  %s666_s0 = smov 96   ;;  %v667_v41 = vmov 1983009808  }
   0x6   :  { %585 = vmatpush3.bf16.msra.mxu0 %v627_v2  ;;  %v253_v13 = vshrl.u32 %v252_v12, 7  ;;  %v255_v14 = vand.u32 127, %v252_v12  ;;  %v438_v42 = vunpack.c.l.s4 %v667_v41  ;;  %v668_v43 = vmov 1934713408   ;;  %s669_s1 = smov 32   ;;  %s670_s20 = smov 48  }
   0x7   :  { %586 = vmatprep.subr.bf16.mxu0 %v663_v1  ;;  %v469_v44 = vunpack.c.l.s4 %v668_v43  ;;  %s671_s21 = smov 16   ;;  %s672_s22 = smov 64   ;;  %vm531_vm5 = vcmask 261120   ;;  %vm533_vm6 = vcmask 392192   ;;  %vm536_vm7 = vcmask 654336  }
   0x8   :  { %vm256_vm3 = vcmp.ge.s32.totalorder %v253_v13, %v255_v14  ;;  %v439_v45 = vunpack.c.0.s8 %v438_v42  ;;  %s673_s23 = smov 80   ;;  %vm538_vm8 = vcmask 785408   ;;  %s674_s24 = smov [#allocation2]   ;;  %vm540_vm9 = vcmask 916480  }
   0x9   :  { %v470_v47 = vunpack.c.0.s8 %v469_v44  ;;  %s549_s25 = sshll.u32 %s674_s24, 4  ;;  %s550_s25 = int_to_ptr.vmem [resolvable:$true] %s549_s25 }
   0xa   :  { %587 = vmatpush3.bf16.msra.mxu0 %v628_v3  ;;  %v442_v48 = vsub.s32 %v439_v45, %v253_v13  ;;  %s639_s26 = scalar_lea.vmem %s550_s25, 32  ;;  %p644_p1 = scmp.lt.s32.totalorder %s550_s25, %s550_s25 }
   0xb   :  { %588 = vmatprep.subr.bf16.mxu0 %v663_v1  ;;  %v473_v52 = vsub.s32 %v470_v47, %v253_v13  ;;  %p640_p0 = scmp.ne.s32.totalorder %s550_s25, %s639_s26  ;;  %p645_p2 = scmp.lt.s32.totalorder %s639_s26, %s639_s26 }
   0xd   :  { %p646_p3 = por %p645_p2, %p644_p1 }
   0xe   :  { %589 = vmatpush3.bf16.msra.mxu0 %v629_v4 }
   0xf   :  { %p647_p4 = pnand %p646_p3, %p640_p0 }
  0x11   :  { %591 = vmatmul.mubr.msk.bf16.vlgmr.msra.gmra.mrb[0].mxu0 %vm52_vm1, %v630_v5 }
  0xe4   :  { %v90_v6 = vpop.f32.mrb[0].mxu0 }
  0xe5   :  { %98 = vrot.lane.b32.xlu0 %v90_v6, %s665_s19  ;;  %v592_v7 = vpop.f32.mrb[1].mxu0  ;;  %595 = vmatpush3.xpose.msk.msra.mxu1 %vm100_vm2, %v90_v6 }
  0xe6   :  { %v93_v8 = vpop.f32.mrb[2].mxu0  ;;  %599 = vmatprep.subr.mxu1 %v663_v1 }
  0xe7   :  { %v593_v9 = vpop.f32.mrb[3].mxu0 }
  0xe9   :  { %176 = vrot.lane.b32.xlu0 %v93_v8, %s665_s19 }
 0x157   :  { %v99_v10 = vpop.permute.xlu0 %98 }
 0x158   :  { %597 = vmatmul.mubr.msk.f32.vlgmr.msra.gmra.mrb[0].mxu1 %vm100_vm2, %v99_v10 }
 0x159   :  { %600 = vmatpush3.xpose.msk.msra.mxu1 %vm100_vm2, %v93_v8  ;;  %601 = vmatprep.mubr.msk.f32.mxu1 %vm664_vm0, %v663_v1 }
 0x15a   :  { %604 = vmatprep.subr.mxu1 %v663_v1 }
 0x15b   :  { %v177_v11 = vpop.permute.xlu0 %176 }
 0x15c   :  { %602 = vmatmul.mubr.msk.f32.vlgmr.msra.gmra.mrb[2].mxu1 %vm100_vm2, %v177_v11 }
 0x15d   :  { %606 = vmatprep.mubr.msk.f32.mxu1 %vm664_vm0, %v663_v1 }
 0x22b   :  { %v171_v15 = vpop.f32.mrb[0].mxu1 }
 0x22c   :  { %v259_v16 = vsel %vm256_vm3, %v171_v15, -inf  ;;  %v598_v17 = vpop.f32.mrb[1].mxu1 }
 0x22d   :  { %v262_v18 = vsel %vm261_vm4, %v259_v16, -inf }
 0x22e   :  { %263 = vmax.xlane.f32.xlu1 %v262_v18 }
 0x22f   :  { %v248_v19 = vpop.f32.mrb[2].mxu1 }
 0x230   :  { %v260_v20 = vsel %vm256_vm3, %v248_v19, -inf  ;;  %v603_v21 = vpop.f32.mrb[3].mxu1 }
 0x231   :  { %v265_v22 = vsel %vm261_vm4, %v260_v20, -inf }
 0x232   :  { %266 = vmax.xlane.f32.xlu1 %v265_v22 }
 0x243   :  { %284 = vrot.lane.b32.xlu1 %v90_v6, %s666_s0 }
 0x2bb   :  { %v264_v23 = vpop.xlane.xlu1 %263 }
 0x2bc   :  { %v268_v24 = vsub.f32 %v259_v16, %v264_v23 }
 0x2be   :  { %v270_v25 = vmul.f32 1.442695, %v268_v24 }
 0x2bf   :  { %v267_v26 = vpop.xlane.xlu1 %266 }
 0x2c0   :  { %631 = vpow2.f32 %v270_v25  ;;  %v269_v27 = vsub.f32 %v260_v20, %v267_v26 }
 0x2c2   :  { %v272_v28 = vmul.f32 1.442695, %v269_v27 }
 0x2c3   :  { %v285_v29 = vpop.permute.xlu1 %284 }
 0x2c4   :  { %633 = vpow2.f32 %v272_v28  ;;  %605 = vmatpush3.msra.mxu1 %v285_v29 }
 0x2c5   :  { %609 = vmatprep.subr.mxu1 %v663_v1 }
 0x2ca   :  { %v632_v30 = vpop.eup %631 }
 0x2cb   :  { %v274_v31 = vsel %vm261_vm4, %v632_v30, 0.0 }
 0x2cc   :  { %275 = vadd.xlane.f32.xlu0 %v274_v31 }
 0x2ce   :  { %v634_v32 = vpop.eup %633 }
 0x2cf   :  { %v277_v33 = vsel %vm261_vm4, %v634_v32, 0.0 }
 0x2d0   :  { %278 = vadd.xlane.f32.xlu1 %v277_v33 }
 0x2e1   :  { %360 = vrot.lane.b32.xlu1 %v93_v8, %s666_s0 }
 0x359   :  { %v276_v34 = vpop.xlane.xlu0 %275 }
 0x35a   :  { %635 = vrcp.f32 %v276_v34 }
 0x35d   :  { %v279_v35 = vpop.xlane.xlu1 %278 }
 0x35e   :  { %637 = vrcp.f32 %v279_v35 }
 0x361   :  { %v361_v38 = vpop.permute.xlu1 %360 }
 0x364   :  { %v636_v36 = vpop.eup %635 }
 0x365   :  { %v282_v37 = vmul.f32 %v636_v36, %v632_v30 }
 0x367   :  { %607 = vmatmul.mubr.msk.f32.vlgmr.msra.gmra.mrb[4].mxu1 %vm261_vm4, %v282_v37 }
 0x368   :  { %v638_v39 = vpop.eup %637  ;;  %610 = vmatpush3.msra.mxu1 %v361_v38  ;;  %611 = vmatprep.mubr.msk.f32.mxu1 %vm664_vm0, %v663_v1 }
 0x369   :  { %v283_v40 = vmul.f32 %v638_v39, %v634_v32 }
 0x36b   :  { %612 = vmatmul.mubr.msk.f32.vlgmr.msra.gmra.mrb[6].mxu1 %vm261_vm4, %v283_v40 }
 0x43a   :  { %v356_v46 = vpop.f32.mrb[4].mxu1 }
 0x43b   :  { %v608_v49 = vpop.f32.mrb[5].mxu1  ;;  %v436_v50 = vcombine.high %v356_v46, %v663_v1  ;;  %v443_v53 = vrot.slane %v356_v46, %v442_v48 }
 0x43d   :  { %v450_v57 = vrot.slane %v436_v50, %v442_v48 }
 0x43e   :  { %v432_v51 = vpop.f32.mrb[6].mxu1 }
 0x43f   :  { %v451_v54 = vcombine.high %v432_v51, %v663_v1  ;;  %v458_v55 = vrot.slane %v432_v51, %v442_v48  ;;  %v613_v56 = vpop.f32.mrb[7].mxu1 }
 0x441   :  { %v465_v58 = vrot.slane %v451_v54, %v442_v48  ;;  %v466_v59 = vcombine.low %v443_v53, %v458_v55  ;;  %v467_v60 = vcombine.high %v443_v53, %v458_v55 }
 0x443   :  { %v474_v61 = vrot.slane %v466_v59, %v473_v52  ;;  %v482_v62 = vcombine.low %v450_v57, %v465_v58  ;;  %v483_v63 = vcombine.high %v450_v57, %v465_v58  ;;  %v481_v0 = vrot.slane %v467_v60, %v473_v52 }
 0x445   :  { %507 = vrot.lane.b32.xlu1 %v481_v0, %s669_s1  ;;  %v499_v2 = vcombine.high %v481_v0, %v663_v1  ;;  %v498_v3 = vcombine.high %v474_v61, %v663_v1  ;;  %v490_v4 = vrot.slane %v482_v62, %v473_v52  ;;  %v497_v5 = vrot.slane %v483_v63, %v473_v52 }
 0x447   :  { %511 = vrot.lane.b32.xlu0 %v499_v2, %s670_s20  ;;  %v500_v6 = vcombine.high %v490_v4, %v663_v1  ;;  %v501_v7 = vcombine.high %v497_v5, %v663_v1 }
 0x449   :  { %503 = vrot.lane.b32.xlu1 %v498_v3, %s671_s21 }
 0x44d   :  { %515 = vrot.lane.b32.xlu1 %v490_v4, %s672_s22 }
 0x451   :  { %523 = vrot.lane.b32.xlu1 %v497_v5, %s666_s0 }
 0x455   :  { %519 = vrot.lane.b32.xlu1 %v500_v6, %s673_s23 }
 0x459   :  { %527 = vrot.lane.b32.xlu1 %v501_v7, %s665_s19 }
 0x4b7   :  { %v508_v8 = vpop.permute.xlu1 %507 }
 0x4b9   :  { %v512_v13 = vpop.permute.xlu0 %511 }
 0x4bb   :  { %v504_v9 = vpop.permute.xlu1 %503 }
 0x4bc   :  { %v530_v10 = vsel %vm100_vm2, %v474_v61, %v504_v9 }
 0x4bd   :  { %v532_v12 = vsel %vm531_vm5, %v530_v10, %v508_v8 }
 0x4be   :  { %v534_v15 = vsel %vm533_vm6, %v532_v12, %v512_v13 }
 0x4bf   :  { %v516_v11 = vpop.permute.xlu1 %515 }
 0x4c0   :  { %v535_v16 = vsel %vm52_vm1, %v534_v15, %v516_v11 }
 0x4c3   :  { %v524_v14 = vpop.permute.xlu1 %523 }
 0x4c7   :  { %v520_v17 = vpop.permute.xlu1 %519 }
 0x4c8   :  { %v537_v18 = vsel %vm536_vm7, %v535_v16, %v520_v17 }
 0x4c9   :  { %v539_v1 = vsel %vm538_vm8, %v537_v18, %v524_v14 }
 0x4cb   :  { %v528_v19 = vpop.permute.xlu1 %527 }
 0x4cc   :  { %v541_v20 = vsel %vm540_vm9, %v539_v1, %v528_v19 }
 0x4cd   :  { %542 = vst [vmem:[#allocation2] sm:$0x3] %v541_v20 }
 0x4ce   :  { %650 = shalt.err (!%p647_p4)
}
 0x4cf   :  { %s651_s29 = scalar_lea.hbm %s762_s2, 32 }
 0x4d0   :  { %p652_p5 = scmp.ne.s32.totalorder %s762_s2, %s651_s29  ;;  %p655_p6 = scmp.lt.u32.totalorder %s651_s29, %s762_s2 }
 0x4d2   :  { %p657_p7 = pnand %p655_p6, %p652_p5 }
 0x4d4   :  { %660 = shalt.err (!%p657_p7)
}
 0x4d5   :  { %552 = dma.vmem_to_hbm [thread:$0]  %s550_s25, 32, %s762_s2, [#allocation3]  }
 0x4d6   :  { %661 = dma.done.wait [#allocation3], 32  }
 0x4d7   :  { %662 = vsyncadd [#allocation3], 4294967264 }
 0x4d8   :  { %556 = vsyncpa [#allocation3], 1 }

</bundles_post_ra>
